<compile_context>
chip_gen: v5e
topology: v5e:2x2
jax: 0.10.0
libtpu: 0.0.40
codegen_flags: <defaults>
</compile_context>

<pallas_src>
import functools

import jax
import jax.numpy as jnp
from jax import lax
from jax.experimental import pallas as pl
from jax.experimental.pallas import tpu as pltpu

_EPS = 1e-8
_LANES = 128


def _pairwise_loss_kernel(e1_ref, e2_ref, lab_ref, out_ref, *, margin, batch,
                          tile_b):
    tile = pl.program_id(0)

    e1 = e1_ref[...].astype(jnp.float32)      # (TB, D)
    e2 = e2_ref[...].astype(jnp.float32)      # (TB, D)
    lab = lab_ref[...].astype(jnp.float32)    # (TB, 1)

    # Row-wise lane reductions (XLU).
    dot = jnp.sum(e1 * e2, axis=-1, keepdims=True)    # (TB, 1)
    n1sq = jnp.sum(e1 * e1, axis=-1, keepdims=True)
    n2sq = jnp.sum(e2 * e2, axis=-1, keepdims=True)

    # 1 / max(||e||, eps) == rsqrt(max(||e||^2, eps^2))  -> EUP, no sqrt + div.
    inv1 = lax.rsqrt(jnp.maximum(n1sq, _EPS * _EPS))
    inv2 = lax.rsqrt(jnp.maximum(n2sq, _EPS * _EPS))
    sim = dot * inv1 * inv2                            # (TB, 1)

    positive_loss = lab * (1.0 - sim)
    negative_loss = (1.0 - lab) * jnp.maximum(margin - sim, 0.0)
    loss = positive_loss + negative_loss               # (TB, 1)

    # Mask rows beyond the true batch (last partial tile when B % TB != 0).
    row = tile * tile_b + lax.broadcasted_iota(jnp.int32, loss.shape, 0)
    loss = jnp.where(row < batch, loss, 0.0)

    partial = jnp.sum(loss)                            # scalar per tile

    # Lane-dense (1, 128) store: partial sum in lane 0, zeros elsewhere.
    lane = lax.broadcasted_iota(jnp.int32, (1, _LANES), 1)
    out_ref[...] = jnp.where(lane == 0, partial, 0.0)


def _choose_tile_b(batch, dim, itemsize):
    # 2 streamed inputs x 2 pipeline buffers per input must fit the budget.
    budget_bytes = 24 * 1024 * 1024
    tb = budget_bytes // (2 * 2 * dim * itemsize)
    tb = max(8, (tb // 8) * 8)   # sublane-aligned
    tb = min(tb, 512)            # diminishing returns past ~512 rows
    return batch if batch <= tb else tb


def pairwise_loss(emb1, emb2, labels, margin=0.1):
    """Pallas TPU implementation of PairwiseLoss.forward."""
    assert emb1.shape == emb2.shape and emb1.ndim == 2
    B, D = emb1.shape
    labels2d = labels.reshape(B, 1).astype(jnp.float32)

    TB = _choose_tile_b(B, D, jnp.dtype(emb1.dtype).itemsize)
    num_tiles = -(-B // TB)

    kernel = functools.partial(
        _pairwise_loss_kernel, margin=float(margin), batch=B, tile_b=TB)

    itemsize = jnp.dtype(emb1.dtype).itemsize
    cost = pl.CostEstimate(
        flops=6 * B * D + 8 * B,
        transcendentals=2 * B,                    # two rsqrt per row
        bytes_accessed=2 * B * D * itemsize + 4 * B + 4 * _LANES * num_tiles,
    )

    partials = pl.pallas_call(
        kernel,
        out_shape=jax.ShapeDtypeStruct((1, _LANES * num_tiles), jnp.float32),
        grid=(num_tiles,),
        in_specs=[
            pl.BlockSpec((TB, D), lambda i: (i, 0)),
            pl.BlockSpec((TB, D), lambda i: (i, 0)),
            pl.BlockSpec((TB, 1), lambda i: (i, 0)),
        ],
        out_specs=pl.BlockSpec((1, _LANES), lambda i: (0, i)),
        compiler_params=pltpu.CompilerParams(
            dimension_semantics=("parallel",),
            vmem_limit_bytes=32 * 1024 * 1024,
        ),
        cost_estimate=cost,
    )(emb1, emb2, labels2d)

    # Tiny final reduction outside the kernel; divide by the true batch size.
    return jnp.sum(partials) / B


def _reference(emb1, emb2, labels, margin=0.1):
    e1 = emb1.astype(jnp.float32)
    e2 = emb2.astype(jnp.float32)
    dot = jnp.sum(e1 * e2, axis=-1)
    n1 = jnp.sqrt(jnp.sum(e1 * e1, axis=-1))
    n2 = jnp.sqrt(jnp.sum(e2 * e2, axis=-1))
    sim = dot / (jnp.maximum(n1, _EPS) * jnp.maximum(n2, _EPS))
    lab = labels.astype(jnp.float32)
    loss = lab * (1.0 - sim) + (1.0 - lab) * jnp.maximum(margin - sim, 0.0)
    return jnp.mean(loss)


if __name__ == "__main__":
    key = jax.random.PRNGKey(0)
    k1, k2, k3 = jax.random.split(key, 3)

    B, D = 8, 32  # small batch of embedding pairs
    emb1 = jax.random.normal(k1, (B, D), dtype=jnp.float32)
    emb2 = jax.random.normal(k2, (B, D), dtype=jnp.float32)
    labels = jax.random.bernoulli(k3, 0.5, (B,)).astype(jnp.float32)

    out = pairwise_loss(emb1, emb2, labels, margin=0.1)
    out = jax.block_until_ready(out)

    ref = _reference(emb1, emb2, labels, margin=0.1)
    assert jnp.allclose(out, ref, atol=2e-5, rtol=2e-5), (out, ref)

    # Also exercise the multi-tile / partial-tile path (B not a multiple of TB).
    B2, D2 = 1000, 256
    e1b = jax.random.normal(k1, (B2, D2), dtype=jnp.float32)
    e2b = jax.random.normal(k2, (B2, D2), dtype=jnp.float32)
    labb = jax.random.bernoulli(k3, 0.5, (B2,)).astype(jnp.float32)
    out2 = jax.block_until_ready(pairwise_loss(e1b, e2b, labb, margin=0.1))
    ref2 = _reference(e1b, e2b, labb, margin=0.1)
    assert jnp.allclose(out2, ref2, atol=2e-5, rtol=2e-5), (out2, ref2)

    print("KERNEL_OK")
</pallas_src>

<mosaic_0001>
module attributes {stable_mosaic.version = 11 : i64} {
  func.func @_pairwise_loss_kernel(%arg0: i32, %arg1: memref<8x32xf32, #tpu.memory_space<vmem>>, %arg2: memref<8x32xf32, #tpu.memory_space<vmem>>, %arg3: memref<8x1xf32, #tpu.memory_space<vmem>>, %arg4: memref<1x128xf32, #tpu.memory_space<vmem>>) attributes {dimension_semantics = [#tpu.dimension_semantics<parallel>], iteration_bounds = array<i64: 1>, scalar_prefetch = 0 : i64, scratch_operands = 0 : i64, tpu.core_type = #tpu.core_type<tc>, window_params = [{transform_indices = @transform_0, window_bounds = array<i64: 8, 32>}, {transform_indices = @transform_1, window_bounds = array<i64: 8, 32>}, {transform_indices = @transform_2, window_bounds = array<i64: 8, 1>}, {transform_indices = @transform_3, window_bounds = array<i64: 1, 128>}]} {
    %c0 = arith.constant 0 : index
    %c0_0 = arith.constant 0 : index
    %0 = vector.load %arg1[%c0, %c0_0] : memref<8x32xf32, #tpu.memory_space<vmem>>, vector<8x32xf32>
    %c0_1 = arith.constant 0 : index
    %c0_2 = arith.constant 0 : index
    %1 = vector.load %arg2[%c0_1, %c0_2] : memref<8x32xf32, #tpu.memory_space<vmem>>, vector<8x32xf32>
    %c0_3 = arith.constant 0 : index
    %c0_4 = arith.constant 0 : index
    %2 = vector.load %arg3[%c0_3, %c0_4] : memref<8x1xf32, #tpu.memory_space<vmem>>, vector<8x1xf32>
    %3 = arith.mulf %0, %1 : vector<8x32xf32>
    %cst = arith.constant dense<0.000000e+00> : vector<8xf32>
    %4 = vector.multi_reduction <add>, %3, %cst [1] : vector<8x32xf32> to vector<8xf32>
    %5 = vector.shape_cast %4 : vector<8xf32> to vector<8x1xf32>
    %6 = arith.mulf %0, %0 : vector<8x32xf32>
    %cst_5 = arith.constant dense<0.000000e+00> : vector<8xf32>
    %7 = vector.multi_reduction <add>, %6, %cst_5 [1] : vector<8x32xf32> to vector<8xf32>
    %8 = vector.shape_cast %7 : vector<8xf32> to vector<8x1xf32>
    %9 = arith.mulf %1, %1 : vector<8x32xf32>
    %cst_6 = arith.constant dense<0.000000e+00> : vector<8xf32>
    %10 = vector.multi_reduction <add>, %9, %cst_6 [1] : vector<8x32xf32> to vector<8xf32>
    %11 = vector.shape_cast %10 : vector<8xf32> to vector<8x1xf32>
    %cst_7 = arith.constant 1.000000e-16 : f32
    %12 = vector.broadcast %cst_7 : f32 to vector<8x1xf32>
    %13 = arith.maximumf %8, %12 : vector<8x1xf32>
    %14 = math.rsqrt %13 : vector<8x1xf32>
    %cst_8 = arith.constant 1.000000e-16 : f32
    %15 = vector.broadcast %cst_8 : f32 to vector<8x1xf32>
    %16 = arith.maximumf %11, %15 : vector<8x1xf32>
    %17 = math.rsqrt %16 : vector<8x1xf32>
    %18 = arith.mulf %5, %14 : vector<8x1xf32>
    %19 = arith.mulf %18, %17 : vector<8x1xf32>
    %cst_9 = arith.constant 1.000000e+00 : f32
    %20 = vector.broadcast %cst_9 : f32 to vector<8x1xf32>
    %21 = arith.subf %20, %19 : vector<8x1xf32>
    %22 = arith.mulf %2, %21 : vector<8x1xf32>
    %cst_10 = arith.constant 1.000000e+00 : f32
    %23 = vector.broadcast %cst_10 : f32 to vector<8x1xf32>
    %24 = arith.subf %23, %2 : vector<8x1xf32>
    %cst_11 = arith.constant 1.000000e-01 : f32
    %25 = vector.broadcast %cst_11 : f32 to vector<8x1xf32>
    %26 = arith.subf %25, %19 : vector<8x1xf32>
    %cst_12 = arith.constant 0.000000e+00 : f32
    %27 = vector.broadcast %cst_12 : f32 to vector<8x1xf32>
    %28 = arith.maximumf %26, %27 : vector<8x1xf32>
    %29 = arith.mulf %24, %28 : vector<8x1xf32>
    %30 = arith.addf %22, %29 : vector<8x1xf32>
    %c8_i32 = arith.constant 8 : i32
    %31 = arith.muli %arg0, %c8_i32 : i32
    %32 = tpu.iota {dimensions = array<i32: 0>} : vector<8x1xi32>
    %33 = vector.broadcast %31 : i32 to vector<8x1xi32>
    %34 = arith.addi %33, %32 : vector<8x1xi32>
    %c8_i32_13 = arith.constant 8 : i32
    %35 = vector.broadcast %c8_i32_13 : i32 to vector<8x1xi32>
    %36 = arith.cmpi slt, %34, %35 : vector<8x1xi32>
    %cst_14 = arith.constant 0.000000e+00 : f32
    %37 = vector.broadcast %cst_14 : f32 to vector<8x1xf32>
    %38 = arith.select %36, %30, %37 : vector<8x1xi1>, vector<8x1xf32>
    %39 = vector.shape_cast %38 : vector<8x1xf32> to vector<1x8x1xf32>
    %cst_15 = arith.constant dense<0.000000e+00> : vector<1xf32>
    %40 = vector.multi_reduction <add>, %39, %cst_15 [1, 2] : vector<1x8x1xf32> to vector<1xf32>
    %41 = vector.shape_cast %40 : vector<1xf32> to vector<1x1x1xf32>
    %42 = vector.extract %41[0, 0, 0] : f32 from vector<1x1x1xf32>
    %43 = tpu.iota {dimensions = array<i32: 1>} : vector<1x128xi32>
    %c0_i32 = arith.constant 0 : i32
    %44 = vector.broadcast %c0_i32 : i32 to vector<1x128xi32>
    %45 = arith.cmpi eq, %43, %44 : vector<1x128xi32>
    %cst_16 = arith.constant 0.000000e+00 : f32
    %46 = vector.broadcast %42 : f32 to vector<1x128xf32>
    %47 = vector.broadcast %cst_16 : f32 to vector<1x128xf32>
    %48 = arith.select %45, %46, %47 : vector<1x128xi1>, vector<1x128xf32>
    %c0_17 = arith.constant 0 : index
    %c0_18 = arith.constant 0 : index
    %49 = vector.load %arg4[%c0_17, %c0_18] : memref<1x128xf32, #tpu.memory_space<vmem>>, vector<1x128xf32>
    tpu.vector_store %arg4[%c0_17, %c0_18], %48 {strides = array<i32>} : memref<1x128xf32, #tpu.memory_space<vmem>>, vector<1x128xf32>,
    return
  }
  func.func @transform_0(%arg0: i32) -> (i32, i32) {
    %c0_i32 = arith.constant 0 : i32
    %c0_i32_0 = arith.constant 0 : i32
    return %arg0, %c0_i32 : i32, i32
  }
  func.func @transform_1(%arg0: i32) -> (i32, i32) {
    %c0_i32 = arith.constant 0 : i32
    %c0_i32_0 = arith.constant 0 : i32
    return %arg0, %c0_i32 : i32, i32
  }
  func.func @transform_2(%arg0: i32) -> (i32, i32) {
    %c0_i32 = arith.constant 0 : i32
    %c0_i32_0 = arith.constant 0 : i32
    return %arg0, %c0_i32 : i32, i32
  }
  func.func @transform_3(%arg0: i32) -> (i32, i32) {
    %c0_i32 = arith.constant 0 : i32
    %c0_i32_0 = arith.constant 0 : i32
    return %c0_i32, %arg0 : i32, i32
  }
}

</mosaic_0001>

<bundles_post_ra>
// kernel: tpu_custom_call.1
= control target key start
LH: loop header
LB: loop body
LE: loop exit
PB: predicated region body
PF: predicated region fallthrough
CT: control target
= control target key end

     0   :  { %8 = vsyncpa [#allocation3], 0  ;;  %s211_s0 = inlined_call_operand.vmem [shape: f32[8,32], index: 0, kind: input, shape index: {}]   ;;  %s212_s1 = inlined_call_operand.hbm [shape: f32[8,32], index: 1, kind: input, shape index: {}]   ;;  %s213_s2 = inlined_call_operand.vmem [shape: f32[8,1], index: 2, kind: input, shape index: {}]   ;;  %s214_s3 = inlined_call_operand.hbm [shape: f32[1,128], index: 3, kind: output, shape index: {}]  }
   0x1   :  { %9 = vsyncpa [#allocation4], 0  ;;  %s17_s14 = sshll.u32 %s212_s1, 4  ;;  %s177_s15 = smov [#allocation2]   ;;  %s18_s14 = int_to_ptr.hbm [resolvable:$true] %s17_s14 }
   0x2   :  { %s19_s16 = sshll.u32 %s177_s15, 4  ;;  %s20_s16 = int_to_ptr.vmem [resolvable:$true] %s19_s16 }
   0x3   :  { %22 = dma.hbm_to_vmem [thread:$0]  %s18_s14, 128, %s20_s16, [#allocation3]  }
   0x4   :  { %173 = dma.done.wait [#allocation3], 128  }
   0x5   :  { %174 = vsyncadd [#allocation3], 4294967168  ;;  %v29_v0 = vld [vmem:[%s211_s0] sm:$0xff]  ;;  %vm33_vm0 = vcmask 261120   ;;  %vm83_vm7 = vcmask 7168   ;;  %v94_v45 = vlaneseq  ;;  %s107_s22 = sshll.u32 %s214_s3, 4  ;;  %s108_s22 = int_to_ptr.hbm [resolvable:$true] %s107_s22 }
   0x6   :  { %v30_v1 = vld [vmem:[#allocation2] sm:$0xff]  ;;  %v37_v2 = vmul.f32 %v29_v0, %v29_v0 }
   0x7   :  { %v32_v3 = vmul.f32 %v30_v1, %v29_v0  ;;  %v41_v6 = vmul.f32 %v30_v1, %v30_v1  ;;  %v31_v28 = vld [vmem:[%s213_s2] sm:$0xff]  ;;  %v95_v46 = vand.u32 127, %v94_v45  ;;  %s178_s2 = smov [#allocation5]  }
   0x8   :  { %v38_v4 = vsel %vm33_vm0, %v37_v2, 0.0  ;;  %v71_v32 = vsub.f32 1.0, %v31_v28  ;;  %s105_s19 = sshll.u32 %s178_s2, 4  ;;  %s106_s19 = int_to_ptr.vmem [resolvable:$true] %s105_s19 }
   0x9   :  { %v34_v5 = vsel %vm33_vm0, %v32_v3, 0.0  ;;  %39 = vadd.xlane.f32.xlu0 %v38_v4  ;;  %v42_v7 = vsel %vm33_vm0, %v41_v6, 0.0  ;;  %vm96_vm8 = vcmp.eq.s32.totalorder %v95_v46, 0 }
   0xa   :  { %35 = vadd.xlane.f32.xlu1 %v34_v5 }
  0x11   :  { %43 = vadd.xlane.f32.xlu0 %v42_v7 }
  0x7c   :  { %v40_v8 = vpop.xlane.xlu0 %39 }
  0x7d   :  { %v45_v9 = vmax.f32 %v40_v8, 1e-16  ;;  %v36_v24 = vpop.xlane.xlu1 %35 }
  0x7f   :  { %121 = vrsqrt.f32 %v45_v9  ;;  %vm52_vm2 = vweird.f32 %v45_v9 }
  0x84   :  { %v44_v10 = vpop.xlane.xlu0 %43 }
  0x85   :  { %v122_v11 = vpop.eup %121  ;;  %v56_v12 = vmax.f32 %v44_v10, 1e-16 }
  0x86   :  { %v47_v13 = vmul.f32 %v122_v11, %v45_v9  ;;  %vm53_vm1 = vweird.f32 %v122_v11 }
  0x87   :  { %123 = vrsqrt.f32 %v56_v12  ;;  %vm54_vm3 = vmor %vm52_vm2, %vm53_vm1  ;;  %vm63_vm5 = vweird.f32 %v56_v12 }
  0x88   :  { %v48_v14 = vmul.f32 %v122_v11, %v47_v13 }
  0x8a   :  { %v49_v15 = vmul.f32 0.5, %v48_v14 }
  0x8c   :  { %v50_v16 = vsub.f32 1.5, %v49_v15 }
  0x8d   :  { %v124_v17 = vpop.eup %123 }
  0x8e   :  { %v58_v18 = vmul.f32 %v124_v17, %v56_v12  ;;  %v51_v20 = vmul.f32 %v122_v11, %v50_v16  ;;  %vm64_vm4 = vweird.f32 %v124_v17 }
  0x8f   :  { %vm65_vm6 = vmor %vm63_vm5, %vm64_vm4 }
  0x90   :  { %v59_v19 = vmul.f32 %v124_v17, %v58_v18  ;;  %v55_v23 = vsel %vm54_vm3, %v122_v11, %v51_v20 }
  0x91   :  { %v67_v26 = vmul.f32 %v55_v23, %v36_v24 }
  0x92   :  { %v60_v21 = vmul.f32 0.5, %v59_v19 }
  0x94   :  { %v61_v22 = vsub.f32 1.5, %v60_v21 }
  0x96   :  { %v62_v25 = vmul.f32 %v124_v17, %v61_v22 }
  0x98   :  { %v66_v27 = vsel %vm65_vm6, %v124_v17, %v62_v25 }
  0x99   :  { %v68_v29 = vmul.f32 %v67_v26, %v66_v27 }
  0x9b   :  { %v69_v30 = vsub.f32 1.0, %v68_v29  ;;  %v72_v31 = vsub.f32 0.1, %v68_v29 }
  0x9d   :  { %v73_v33 = vmax.f32 %v72_v31, 0.0  ;;  %v70_v34 = vmul.f32 %v69_v30, %v31_v28 }
  0x9f   :  { %v74_v35 = vmul.f32 %v73_v33, %v71_v32 }
  0xa1   :  { %v75_v36 = vadd.f32 %v74_v35, %v70_v34 }
  0xa3   :  { %v84_v37 = vsel %vm83_vm7, %v75_v36, 0.0 }
  0xa4   :  { %85 = vadd.xlane.f32.xlu1 %v84_v37 }
 0x117   :  { %v86_v38 = vpop.xlane.xlu1 %85 }
 0x118   :  { %v87_v39 = vrot.slane %v86_v38, 4 }
 0x11a   :  { %v88_v40 = vadd.f32 %v87_v39, %v86_v38 }
 0x11c   :  { %v89_v41 = vrot.slane %v88_v40, 2 }
 0x11e   :  { %v90_v42 = vadd.f32 %v89_v41, %v88_v40 }
 0x120   :  { %v91_v43 = vrot.slane %v90_v42, 1 }
 0x122   :  { %v92_v44 = vadd.f32 %v91_v43, %v90_v42 }
 0x124   :  { %117 = vpush %v92_v44 }
 0x155   :  { %s118_s23 = spop %117 }
 0x156   :  { %v97_v47 = vstv %s118_s23 }
 0x157   :  { %v98_v48 = vsel %vm96_vm8, %v97_v47, 0.0 }
 0x158   :  { %99 = vst [vmem:[#allocation5] sm:$0x1] %v98_v48 }
 0x159   :  { %110 = dma.vmem_to_hbm [thread:$0]  %s106_s19, 16, %s108_s22, [#allocation4]  }
 0x15a   :  { %175 = dma.done.wait [#allocation4], 16  }
 0x15b   :  { %176 = vsyncadd [#allocation4], 4294967280 }
 0x15c   :  { %115 = vsyncpa [#allocation3], 1 }
 0x15d   :  { %116 = vsyncpa [#allocation4], 1 }

</bundles_post_ra>
